<compile_context>
chip_gen: v7x
topology: tpu7x:2x2x1
jax: 0.10.0
libtpu: 0.0.40
codegen_flags: <defaults>
</compile_context>

<pallas_src>
import functools

import jax
import jax.numpy as jnp
from jax.experimental import pallas as pl
from jax.experimental.pallas import tpu as pltpu


def _round_up(n, m):
    return ((n + m - 1) // m) * m


_VMEM_LIMIT_BYTES = 48 * 1024 * 1024  # safe on v7x (64 MiB phys), v6e/v5e (128 MiB)


# ----------------------------- kernel bodies --------------------------------

def _feats_block(depth, x_ref, w0_ref, b0_ref, w1s_ref, b1s_ref,
                 w2s_ref, b2s_ref):
    """Residual MLP trunk for one (TB, F_pad) batch tile.

    bf16 MXU inputs, f32 accumulation, f32 epilogues (bias/ReLU).
    """
    bf16 = jnp.bfloat16
    f32 = jnp.float32
    # Input layer: Linear(num_inputs, num_filts) + ReLU
    h = jnp.dot(x_ref[...].astype(bf16), w0_ref[...], preferred_element_type=f32)
    h = jnp.maximum(h + b0_ref[...], 0.0)
    # Residual blocks (depth is a static Python int -> fully unrolled)
    for d in range(depth):
        y = jnp.dot(h.astype(bf16), w1s_ref[d], preferred_element_type=f32)
        y = jnp.maximum(y + b1s_ref[d], 0.0)
        # nn.Dropout() in eval mode == identity.
        y = jnp.dot(y.astype(bf16), w2s_ref[d], preferred_element_type=f32)
        y = jnp.maximum(y + b2s_ref[d], 0.0)
        h = h + y
    return h


def _feats_kernel(depth, x_ref, w0_ref, b0_ref, w1s_ref, b1s_ref,
                  w2s_ref, b2s_ref, out_ref):
    h = _feats_block(depth, x_ref, w0_ref, b0_ref, w1s_ref, b1s_ref,
                     w2s_ref, b2s_ref)
    out_ref[...] = h.astype(out_ref.dtype)


def _fused_kernel(depth, x_ref, w0_ref, b0_ref, w1s_ref, b1s_ref,
                  w2s_ref, b2s_ref, cw_ref, out_ref, feat_scr):
    # Compute loc_emb once per batch tile; class axis (axis 1) is the inner,
    # in-order ("arbitrary") grid axis so the scratch persists across it.
    @pl.when(pl.program_id(1) == 0)
    def _():
        h = _feats_block(depth, x_ref, w0_ref, b0_ref, w1s_ref, b1s_ref,
                         w2s_ref, b2s_ref)
        feat_scr[...] = h.astype(feat_scr.dtype)

    logits = jnp.dot(feat_scr[...], cw_ref[...],
                     preferred_element_type=jnp.float32)
    # sigmoid(x) == 0.5 * (tanh(0.5 * x) + 1): one EUP op instead of exp+div.
    probs = 0.5 * (jnp.tanh(0.5 * logits) + 1.0)
    out_ref[...] = probs.astype(out_ref.dtype)


# ------------------------------ JAX wrapper ----------------------------------

def _pick_batch_tile(B, block_b):
    """Batch tile: as big as block_b allows, but always >=2 tiles when B > 8
    so the 'parallel' batch axis can split across v7x's two TensorCores."""
    TB = _round_up(min(block_b, max(B, 1)), 8)
    if B > 8 and _round_up(B, TB) // TB < 2:
        TB = max(8, _round_up(-(-B // 2), 8))  # at most half the batch per tile
    B_pad = _round_up(B, TB)
    return TB, B_pad, B_pad // TB


def residual_fcnet_forward(x, params, *, return_feats=True, block_b=512,
                           feats_dtype=jnp.float32):
    """forward(x, return_feats) of ResidualFCNet using packed params.

    return_feats=True  -> loc_emb (dtype = feats_dtype; use bf16 at SINR scale
                          to halve the B x F writeback)
    return_feats=False -> sigmoid(class logits) in bfloat16 (halves the
                          dominant B x C HBM write).
    """
    meta = params["meta"]
    depth = meta["depth"]
    D, F, C = meta["num_inputs"], meta["num_filts"], meta["num_classes"]
    D_pad, F_pad = params["w0"].shape
    B = x.shape[0]

    TB, B_pad, nB = _pick_batch_tile(B, block_b)
    xp = jnp.pad(x.astype(jnp.float32), ((0, B_pad - B), (0, D_pad - D)))

    weight_args = (params["w0"], params["b0"], params["w1s"], params["b1s"],
                   params["w2s"], params["b2s"])

    if return_feats:
        w_specs = [
            pl.BlockSpec((D_pad, F_pad), lambda i: (0, 0)),
            pl.BlockSpec((1, F_pad), lambda i: (0, 0)),
            pl.BlockSpec((depth, F_pad, F_pad), lambda i: (0, 0, 0)),
            pl.BlockSpec((depth, 1, F_pad), lambda i: (0, 0, 0)),
            pl.BlockSpec((depth, F_pad, F_pad), lambda i: (0, 0, 0)),
            pl.BlockSpec((depth, 1, F_pad), lambda i: (0, 0, 0)),
        ]
        out = pl.pallas_call(
            functools.partial(_feats_kernel, depth),
            out_shape=jax.ShapeDtypeStruct((B_pad, F_pad), feats_dtype),
            grid=(nB,),
            in_specs=[pl.BlockSpec((TB, D_pad), lambda i: (i, 0))] + w_specs,
            out_specs=pl.BlockSpec((TB, F_pad), lambda i: (i, 0)),
            compiler_params=pltpu.CompilerParams(
                dimension_semantics=("parallel",),
                vmem_limit_bytes=_VMEM_LIMIT_BYTES),
        )(xp, *weight_args)
        return out[:B, :F]

    # Fused feats + classifier path.
    cw = params["class_w"]
    C_pad = cw.shape[1]
    TC = meta["block_c"]
    nC = C_pad // TC
    w_specs = [
        pl.BlockSpec((D_pad, F_pad), lambda i, j: (0, 0)),
        pl.BlockSpec((1, F_pad), lambda i, j: (0, 0)),
        pl.BlockSpec((depth, F_pad, F_pad), lambda i, j: (0, 0, 0)),
        pl.BlockSpec((depth, 1, F_pad), lambda i, j: (0, 0, 0)),
        pl.BlockSpec((depth, F_pad, F_pad), lambda i, j: (0, 0, 0)),
        pl.BlockSpec((depth, 1, F_pad), lambda i, j: (0, 0, 0)),
    ]
    out = pl.pallas_call(
        functools.partial(_fused_kernel, depth),
        out_shape=jax.ShapeDtypeStruct((B_pad, C_pad), jnp.bfloat16),
        grid=(nB, nC),
        in_specs=([pl.BlockSpec((TB, D_pad), lambda i, j: (i, 0))] + w_specs
                  + [pl.BlockSpec((F_pad, TC), lambda i, j: (0, j))]),
        out_specs=pl.BlockSpec((TB, TC), lambda i, j: (i, j)),
        scratch_shapes=[pltpu.VMEM((TB, F_pad), jnp.bfloat16)],
        compiler_params=pltpu.CompilerParams(
            dimension_semantics=("parallel", "arbitrary"),
            vmem_limit_bytes=_VMEM_LIMIT_BYTES),
    )(xp, *weight_args, cw)
    return out[:B, :C]


# ----------------------- deterministic parameter init ------------------------

def init_params(key, num_inputs, num_filts, num_classes, depth):
    """Raw f32 params in (in, out) layout (PyTorch weights pre-transposed)."""
    ks = jax.random.split(key, 4 + 4 * depth)
    i = 0

    def nxt():
        nonlocal i
        k = ks[i]
        i += 1
        return k

    def linear(k, fan_in, fan_out):
        bound = 1.0 / jnp.sqrt(jnp.float32(fan_in))
        kw, kb = jax.random.split(k)
        w = jax.random.uniform(kw, (fan_in, fan_out), jnp.float32, -bound, bound)
        b = jax.random.uniform(kb, (1, fan_out), jnp.float32, -bound, bound)
        return w, b

    w0, b0 = linear(nxt(), num_inputs, num_filts)
    w1s, b1s, w2s, b2s = [], [], [], []
    for _ in range(depth):
        w1, b1 = linear(nxt(), num_filts, num_filts)
        w2, b2 = linear(nxt(), num_filts, num_filts)
        w1s.append(w1); b1s.append(b1); w2s.append(w2); b2s.append(b2)

    bound = 1.0 / jnp.sqrt(jnp.float32(num_filts))
    class_w = jax.random.uniform(nxt(), (num_filts, num_classes),
                                 jnp.float32, -bound, bound)

    return {
        "w0": w0, "b0": b0,
        "w1s": jnp.stack(w1s), "b1s": jnp.stack(b1s),
        "w2s": jnp.stack(w2s), "b2s": jnp.stack(b2s),
        "class_w": class_w,
    }


def pack_params(raw, *, block_c=2048):
    """Pad to TPU-friendly shapes (lanes multiple of 128, inputs to 8) and
    cast weights to bf16 (biases stay f32 for f32 epilogues).

    block_c: classifier lane tile.  2048 is a good default for v7x (48 MiB
    VMEM budget with TB=512, bf16 out); v6e can push to 4096-8192."""
    D, F = raw["w0"].shape
    depth = int(raw["w1s"].shape[0])
    C = int(raw["class_w"].shape[1])

    D_pad = _round_up(D, 8)
    # Keep F_pad at the native 128-lane width; extra padding of a small F only
    # adds wasted FLOPs/DMA (real SINR F=256 is already MXU-native).
    F_pad = _round_up(F, 128)
    TC = _round_up(min(block_c, _round_up(C, 128)), 128)
    C_pad = _round_up(C, TC)
    bf16 = jnp.bfloat16

    def pad2(a, r, c):
        return jnp.pad(a, ((0, r - a.shape[0]), (0, c - a.shape[1])))

    def pad3(a, r, c):
        return jnp.pad(a, ((0, 0), (0, r - a.shape[1]), (0, c - a.shape[2])))

    return {
        "w0": pad2(raw["w0"], D_pad, F_pad).astype(bf16),
        "b0": pad2(raw["b0"], 1, F_pad).astype(jnp.float32),
        "w1s": pad3(raw["w1s"], F_pad, F_pad).astype(bf16),
        "b1s": pad3(raw["b1s"], 1, F_pad).astype(jnp.float32),
        "w2s": pad3(raw["w2s"], F_pad, F_pad).astype(bf16),
        "b2s": pad3(raw["b2s"], 1, F_pad).astype(jnp.float32),
        "class_w": pad2(raw["class_w"], F_pad, C_pad).astype(bf16),
        "meta": {"num_inputs": D, "num_filts": F, "num_classes": C,
                 "depth": depth, "block_c": TC},
    }


# ------------------------------ pure-JAX ref ---------------------------------

def reference_forward(x, raw, *, depth, return_feats=True):
    """Reference matching kernel numerics: bf16 matmul inputs, f32 accumulate."""
    bf16 = jnp.bfloat16
    f32 = jnp.float32

    def mm(a, w):
        return jnp.dot(a.astype(bf16), w.astype(bf16),
                       preferred_element_type=f32)

    h = jnp.maximum(mm(x, raw["w0"]) + raw["b0"], 0.0)
    for d in range(depth):
        y = jnp.maximum(mm(h, raw["w1s"][d]) + raw["b1s"][d], 0.0)
        y = jnp.maximum(mm(y, raw["w2s"][d]) + raw["b2s"][d], 0.0)
        h = h + y
    if return_feats:
        return h
    return jax.nn.sigmoid(mm(h, raw["class_w"]))


# ---------------------------------- main -------------------------------------

if __name__ == "__main__":
    # config: num_inputs=4, num_filts=32, depth=2, num_classes=300
    NUM_INPUTS, NUM_FILTS, DEPTH, NUM_CLASSES = 4, 32, 2, 300
    B = 256  # split into 2 batch tiles by the >=2-tile rule -> exercises grid

    key = jax.random.PRNGKey(0)
    kx, kp = jax.random.split(key)
    x = jax.random.normal(kx, (B, NUM_INPUTS), jnp.float32)
    raw = init_params(kp, NUM_INPUTS, NUM_FILTS, NUM_CLASSES, DEPTH)
    # Small class tile (128) at toy scale so the class grid axis has 3 steps;
    # at real SINR scale use the block_c=2048 default (4096-8192 on v6e).
    params = pack_params(raw, block_c=128)

    # default forward: return_feats=True -> loc_emb
    feats = residual_fcnet_forward(x, params, return_feats=True)
    feats = jax.block_until_ready(feats)

    # classifier path: return_feats=False -> sigmoid(class_emb(loc_emb)), fused
    preds = residual_fcnet_forward(x, params, return_feats=False)
    preds = jax.block_until_ready(preds)

    ref_feats = reference_forward(x, raw, depth=DEPTH, return_feats=True)
    ref_preds = reference_forward(x, raw, depth=DEPTH, return_feats=False)

    assert feats.shape == (B, NUM_FILTS) and preds.shape == (B, NUM_CLASSES)
    assert feats.dtype == jnp.float32 and preds.dtype == jnp.bfloat16
    assert jnp.allclose(feats, ref_feats, atol=3e-5, rtol=3e-5)
    # preds are bf16 probabilities in [0,1]: bf16 quantization ~4e-3 absolute.
    assert jnp.allclose(preds.astype(jnp.float32), ref_preds,
                        atol=6e-3, rtol=2e-2)

    print("KERNEL_OK")
</pallas_src>

<mosaic_0001>
module attributes {stable_mosaic.version = 11 : i64} {
  func.func @_feats_kernel(%arg0: i32, %arg1: memref<128x8xf32, #tpu.memory_space<vmem>>, %arg2: memref<8x128xbf16, #tpu.memory_space<vmem>>, %arg3: memref<1x128xf32, #tpu.memory_space<vmem>>, %arg4: memref<2x128x128xbf16, #tpu.memory_space<vmem>>, %arg5: memref<2x1x128xf32, #tpu.memory_space<vmem>>, %arg6: memref<2x128x128xbf16, #tpu.memory_space<vmem>>, %arg7: memref<2x1x128xf32, #tpu.memory_space<vmem>>, %arg8: memref<128x128xf32, #tpu.memory_space<vmem>>) attributes {dimension_semantics = [#tpu.dimension_semantics<parallel>], iteration_bounds = array<i64: 2>, scalar_prefetch = 0 : i64, scratch_operands = 0 : i64, tpu.core_type = #tpu.core_type<tc>, window_params = [{transform_indices = @transform_0, window_bounds = array<i64: 128, 8>}, {pipeline_mode = #tpu.pipeline_mode<synchronous>, transform_indices = @transform_1, window_bounds = array<i64: 8, 128>}, {pipeline_mode = #tpu.pipeline_mode<synchronous>, transform_indices = @transform_2, window_bounds = array<i64: 1, 128>}, {pipeline_mode = #tpu.pipeline_mode<synchronous>, transform_indices = @transform_3, window_bounds = array<i64: 2, 128, 128>}, {pipeline_mode = #tpu.pipeline_mode<synchronous>, transform_indices = @transform_4, window_bounds = array<i64: 2, 1, 128>}, {pipeline_mode = #tpu.pipeline_mode<synchronous>, transform_indices = @transform_5, window_bounds = array<i64: 2, 128, 128>}, {pipeline_mode = #tpu.pipeline_mode<synchronous>, transform_indices = @transform_6, window_bounds = array<i64: 2, 1, 128>}, {transform_indices = @transform_7, window_bounds = array<i64: 128, 128>}]} {
    %c0 = arith.constant 0 : index
    %c0_0 = arith.constant 0 : index
    %0 = vector.load %arg1[%c0, %c0_0] : memref<128x8xf32, #tpu.memory_space<vmem>>, vector<128x8xf32>
    %1 = arith.truncf %0 : vector<128x8xf32> to vector<128x8xbf16>
    %c0_1 = arith.constant 0 : index
    %c0_2 = arith.constant 0 : index
    %2 = vector.load %arg2[%c0_1, %c0_2] : memref<8x128xbf16, #tpu.memory_space<vmem>>, vector<8x128xbf16>
    %cst = arith.constant dense<0.000000e+00> : vector<128x128xf32>
    %3 = tpu.matmul %1, %2, %cst {dimension_numbers = #tpu.dot_dimension_numbers<[1], [0], [0], [1], [0, 0, 1, 1], [], []>} : vector<128x8xbf16>, vector<8x128xbf16>, vector<128x128xf32> -> vector<128x128xf32>
    %c0_3 = arith.constant 0 : index
    %c0_4 = arith.constant 0 : index
    %4 = vector.load %arg3[%c0_3, %c0_4] : memref<1x128xf32, #tpu.memory_space<vmem>>, vector<1x128xf32>
    %5 = vector.broadcast %4 : vector<1x128xf32> to vector<128x128xf32>
    %6 = arith.addf %3, %5 : vector<128x128xf32>
    %cst_5 = arith.constant 0.000000e+00 : f32
    %7 = vector.broadcast %cst_5 : f32 to vector<128x128xf32>
    %8 = arith.maximumf %6, %7 : vector<128x128xf32>
    %9 = arith.truncf %8 : vector<128x128xf32> to vector<128x128xbf16>
    %c0_6 = arith.constant 0 : index
    %c0_7 = arith.constant 0 : index
    %c0_8 = arith.constant 0 : index
    %10 = vector.load %arg4[%c0_6, %c0_7, %c0_8] : memref<2x128x128xbf16, #tpu.memory_space<vmem>>, vector<1x128x128xbf16>
    %11 = vector.shape_cast %10 : vector<1x128x128xbf16> to vector<128x128xbf16>
    %cst_9 = arith.constant dense<0.000000e+00> : vector<128x128xf32>
    %12 = tpu.matmul %9, %11, %cst_9 {dimension_numbers = #tpu.dot_dimension_numbers<[1], [0], [0], [1], [0, 0, 1, 1], [], []>} : vector<128x128xbf16>, vector<128x128xbf16>, vector<128x128xf32> -> vector<128x128xf32>
    %c0_10 = arith.constant 0 : index
    %c0_11 = arith.constant 0 : index
    %c0_12 = arith.constant 0 : index
    %13 = vector.load %arg5[%c0_10, %c0_11, %c0_12] : memref<2x1x128xf32, #tpu.memory_space<vmem>>, vector<1x1x128xf32>
    %14 = vector.shape_cast %13 : vector<1x1x128xf32> to vector<1x128xf32>
    %15 = vector.broadcast %14 : vector<1x128xf32> to vector<128x128xf32>
    %16 = arith.addf %12, %15 : vector<128x128xf32>
    %cst_13 = arith.constant 0.000000e+00 : f32
    %17 = vector.broadcast %cst_13 : f32 to vector<128x128xf32>
    %18 = arith.maximumf %16, %17 : vector<128x128xf32>
    %19 = arith.truncf %18 : vector<128x128xf32> to vector<128x128xbf16>
    %c0_14 = arith.constant 0 : index
    %c0_15 = arith.constant 0 : index
    %c0_16 = arith.constant 0 : index
    %20 = vector.load %arg6[%c0_14, %c0_15, %c0_16] : memref<2x128x128xbf16, #tpu.memory_space<vmem>>, vector<1x128x128xbf16>
    %21 = vector.shape_cast %20 : vector<1x128x128xbf16> to vector<128x128xbf16>
    %cst_17 = arith.constant dense<0.000000e+00> : vector<128x128xf32>
    %22 = tpu.matmul %19, %21, %cst_17 {dimension_numbers = #tpu.dot_dimension_numbers<[1], [0], [0], [1], [0, 0, 1, 1], [], []>} : vector<128x128xbf16>, vector<128x128xbf16>, vector<128x128xf32> -> vector<128x128xf32>
    %c0_18 = arith.constant 0 : index
    %c0_19 = arith.constant 0 : index
    %c0_20 = arith.constant 0 : index
    %23 = vector.load %arg7[%c0_18, %c0_19, %c0_20] : memref<2x1x128xf32, #tpu.memory_space<vmem>>, vector<1x1x128xf32>
    %24 = vector.shape_cast %23 : vector<1x1x128xf32> to vector<1x128xf32>
    %25 = vector.broadcast %24 : vector<1x128xf32> to vector<128x128xf32>
    %26 = arith.addf %22, %25 : vector<128x128xf32>
    %cst_21 = arith.constant 0.000000e+00 : f32
    %27 = vector.broadcast %cst_21 : f32 to vector<128x128xf32>
    %28 = arith.maximumf %26, %27 : vector<128x128xf32>
    %29 = arith.addf %8, %28 : vector<128x128xf32>
    %30 = arith.truncf %29 : vector<128x128xf32> to vector<128x128xbf16>
    %c1 = arith.constant 1 : index
    %c0_22 = arith.constant 0 : index
    %c0_23 = arith.constant 0 : index
    %31 = vector.load %arg4[%c1, %c0_22, %c0_23] : memref<2x128x128xbf16, #tpu.memory_space<vmem>>, vector<1x128x128xbf16>
    %32 = vector.shape_cast %31 : vector<1x128x128xbf16> to vector<128x128xbf16>
    %cst_24 = arith.constant dense<0.000000e+00> : vector<128x128xf32>
    %33 = tpu.matmul %30, %32, %cst_24 {dimension_numbers = #tpu.dot_dimension_numbers<[1], [0], [0], [1], [0, 0, 1, 1], [], []>} : vector<128x128xbf16>, vector<128x128xbf16>, vector<128x128xf32> -> vector<128x128xf32>
    %c1_25 = arith.constant 1 : index
    %c0_26 = arith.constant 0 : index
    %c0_27 = arith.constant 0 : index
    %34 = vector.load %arg5[%c1_25, %c0_26, %c0_27] : memref<2x1x128xf32, #tpu.memory_space<vmem>>, vector<1x1x128xf32>
    %35 = vector.shape_cast %34 : vector<1x1x128xf32> to vector<1x128xf32>
    %36 = vector.broadcast %35 : vector<1x128xf32> to vector<128x128xf32>
    %37 = arith.addf %33, %36 : vector<128x128xf32>
    %cst_28 = arith.constant 0.000000e+00 : f32
    %38 = vector.broadcast %cst_28 : f32 to vector<128x128xf32>
    %39 = arith.maximumf %37, %38 : vector<128x128xf32>
    %40 = arith.truncf %39 : vector<128x128xf32> to vector<128x128xbf16>
    %c1_29 = arith.constant 1 : index
    %c0_30 = arith.constant 0 : index
    %c0_31 = arith.constant 0 : index
    %41 = vector.load %arg6[%c1_29, %c0_30, %c0_31] : memref<2x128x128xbf16, #tpu.memory_space<vmem>>, vector<1x128x128xbf16>
    %42 = vector.shape_cast %41 : vector<1x128x128xbf16> to vector<128x128xbf16>
    %cst_32 = arith.constant dense<0.000000e+00> : vector<128x128xf32>
    %43 = tpu.matmul %40, %42, %cst_32 {dimension_numbers = #tpu.dot_dimension_numbers<[1], [0], [0], [1], [0, 0, 1, 1], [], []>} : vector<128x128xbf16>, vector<128x128xbf16>, vector<128x128xf32> -> vector<128x128xf32>
    %c1_33 = arith.constant 1 : index
    %c0_34 = arith.constant 0 : index
    %c0_35 = arith.constant 0 : index
    %44 = vector.load %arg7[%c1_33, %c0_34, %c0_35] : memref<2x1x128xf32, #tpu.memory_space<vmem>>, vector<1x1x128xf32>
    %45 = vector.shape_cast %44 : vector<1x1x128xf32> to vector<1x128xf32>
    %46 = vector.broadcast %45 : vector<1x128xf32> to vector<128x128xf32>
    %47 = arith.addf %43, %46 : vector<128x128xf32>
    %cst_36 = arith.constant 0.000000e+00 : f32
    %48 = vector.broadcast %cst_36 : f32 to vector<128x128xf32>
    %49 = arith.maximumf %47, %48 : vector<128x128xf32>
    %50 = arith.addf %29, %49 : vector<128x128xf32>
    %c0_37 = arith.constant 0 : index
    %c0_38 = arith.constant 0 : index
    %51 = vector.load %arg8[%c0_37, %c0_38] : memref<128x128xf32, #tpu.memory_space<vmem>>, vector<128x128xf32>
    tpu.vector_store %arg8[%c0_37, %c0_38], %50 {strides = array<i32>} : memref<128x128xf32, #tpu.memory_space<vmem>>, vector<128x128xf32>,
    return
  }
  func.func @transform_0(%arg0: i32) -> (i32, i32) {
    %c0_i32 = arith.constant 0 : i32
    %c0_i32_0 = arith.constant 0 : i32
    return %arg0, %c0_i32 : i32, i32
  }
  func.func @transform_1(%arg0: i32) -> (i32, i32) {
    %c0_i32 = arith.constant 0 : i32
    %c0_i32_0 = arith.constant 0 : i32
    %c0_i32_1 = arith.constant 0 : i32
    return %c0_i32, %c0_i32_0 : i32, i32
  }
  func.func @transform_2(%arg0: i32) -> (i32, i32) {
    %c0_i32 = arith.constant 0 : i32
    %c0_i32_0 = arith.constant 0 : i32
    %c0_i32_1 = arith.constant 0 : i32
    return %c0_i32, %c0_i32_0 : i32, i32
  }
  func.func @transform_3(%arg0: i32) -> (i32, i32, i32) {
    %c0_i32 = arith.constant 0 : i32
    %c0_i32_0 = arith.constant 0 : i32
    %c0_i32_1 = arith.constant 0 : i32
    %c0_i32_2 = arith.constant 0 : i32
    return %c0_i32, %c0_i32_0, %c0_i32_1 : i32, i32, i32
  }
  func.func @transform_4(%arg0: i32) -> (i32, i32, i32) {
    %c0_i32 = arith.constant 0 : i32
    %c0_i32_0 = arith.constant 0 : i32
    %c0_i32_1 = arith.constant 0 : i32
    %c0_i32_2 = arith.constant 0 : i32
    return %c0_i32, %c0_i32_0, %c0_i32_1 : i32, i32, i32
  }
  func.func @transform_5(%arg0: i32) -> (i32, i32, i32) {
    %c0_i32 = arith.constant 0 : i32
    %c0_i32_0 = arith.constant 0 : i32
    %c0_i32_1 = arith.constant 0 : i32
    %c0_i32_2 = arith.constant 0 : i32
    return %c0_i32, %c0_i32_0, %c0_i32_1 : i32, i32, i32
  }
  func.func @transform_6(%arg0: i32) -> (i32, i32, i32) {
    %c0_i32 = arith.constant 0 : i32
    %c0_i32_0 = arith.constant 0 : i32
    %c0_i32_1 = arith.constant 0 : i32
    %c0_i32_2 = arith.constant 0 : i32
    return %c0_i32, %c0_i32_0, %c0_i32_1 : i32, i32, i32
  }
  func.func @transform_7(%arg0: i32) -> (i32, i32) {
    %c0_i32 = arith.constant 0 : i32
    %c0_i32_0 = arith.constant 0 : i32
    return %arg0, %c0_i32 : i32, i32
  }
}

</mosaic_0001>

<bundles_post_ra>
// kernel: tpu_custom_call.1
= control target key start
LH: loop header
LB: loop body
LE: loop exit
PB: predicated region body
PF: predicated region fallthrough
CT: control target
= control target key end

     0   :  { %12 = vsyncpa [#allocation3], 0  ;;  %s2320_s0 = inlined_call_operand.vmem [shape: f32[256,8], index: 0, kind: input, shape index: {}]   ;;  %s2321_s1 = inlined_call_operand.vmem [shape: bf16[8,128], index: 1, kind: input, shape index: {}]   ;;  %s2322_s2 = inlined_call_operand.vmem [shape: f32[1,128], index: 2, kind: input, shape index: {}]   ;;  %s2323_s3 = inlined_call_operand.vmem [shape: bf16[2,128,128], index: 3, kind: input, shape index: {}]   ;;  %s2324_s4 = inlined_call_operand.vmem [shape: f32[2,1,128], index: 4, kind: input, shape index: {}]   ;;  %s2325_s5 = inlined_call_operand.vmem [shape: bf16[2,128,128], index: 5, kind: input, shape index: {}]   ;;  %s2326_s6 = inlined_call_operand.vmem [shape: f32[2,1,128], index: 6, kind: input, shape index: {}]   ;;  %s2327_s7 = inlined_call_operand.hbm [shape: f32[256,128], index: 7, kind: output, shape index: {}]  }
   0x1   :  { %14 = vsyncpa [#allocation3 + $0x1], 0  ;;  %s1843_s24 = smov 0   ;;  %s1845_s25 = smov 0  }
   0x2   :  { %s1847_s26 = smov 0   ;;  %s1849_s27 = smov 0  }
   0x3 LB: > { %s1864_s28 = sadd.s32 4294967295, %s1798_s27   ;;  %s1351_s29 = sadd.s32 4294967294, %s1798_s27   ;;  %s1798_s27 = sphi %s1849_s27, %s2333_s27   ;;  %s1794_s26 = sphi %s1847_s26, %s2332_s26   ;;  %s1790_s25 = sphi %s1845_s25, %s2331_s25   ;;  %s1786_s24 = sphi %s1843_s24, %s2330_s24  }
   0x4   : > { %s1868_s30 = sadd.s32 1, %s1798_s27   ;;  %s179_s8 = sadd.s32 1, %s1794_s26 }
   0x5   : > { %s176_s9 = ssub.s32 %s1798_s27, %s1868_s30  ;;  %p189_p0 = scmp.ne.s32.totalorder %s1794_s26, %s1790_s25 }
   0x6   : > { %p177_p1 = scmp.eq.s32.totalorder %s176_s9, 0  ;;  %p190_p2 = scmp.eq.s32.totalorder %s1864_s28, 1 }
   0x7   : > { %p195_p3 = scmp.ne.s32.totalorder %s1790_s25, %s1786_s24  ;;  %p196_p4 = scmp.eq.s32.totalorder %s1351_s29, 1 }
   0x8   : > { %s1879_s10 = scalar_select %p177_p1, %s1794_s26, %s179_s8  }
   0x9   : > { %p1881_p5 = por %p190_p2, %p189_p0  ;;  %p1885_p6 = por %p196_p4, %p195_p3 }
   0xa   : > { %p1354_p7 = scmp.ge.s32.totalorder %s1798_s27, 1  ;;  %p241_p8 = scmp.lt.s32.totalorder %s1798_s27, 3 }
   0xc   : > { %p242_p9 = pnand %p1354_p7, %p241_p8 }
   0xd   : > { %v305_v0 = vld [vmem:[%s2321_s1] sm:$0xf] (!%p242_p9)  ;;  %vm338_vm0 = vcmask (!%p242_p9), 1043456   ;;  %s1356_s15 = sshll.u32 (!%p242_p9), %s1864_s28, 4  ;;  %v1705_v3 = vld [vmem:[%s2323_s3 + $0x8] sm:$0xff] (!%p242_p9)   ;;  %v1706_v4 = vld [vmem:[%s2323_s3 + $0x10] sm:$0xff] (!%p242_p9)  }
   0xe   : > { %245 = sbr.rel (%p242_p9) target bundleno = 1178 (0x49a), region = 48  ;;  %v1704_v1 = vld [vmem:[%s2323_s3] sm:$0xff] (!%p242_p9)   ;;  %1662 = vmatprep.subr.msk.bf16.mxu0 (!%p242_p9), %vm338_vm0, %v305_v0  ;;  %v340_v2 = vsel (!%p242_p9), %vm338_vm0, %v305_v0, 0  ;;  %p274_p10 = scmp.lt.s32.totalorder (!%p242_p9), %s1356_s15, 31  ;;  %v1707_v5 = vld [vmem:[%s2323_s3 + $0x18] sm:$0xff] (!%p242_p9)   ;;  %vm313_vm1 = vcmask (!%p242_p9), 64512  }
   0xf   : > { %1517 = vmatpush3.bf16.msra.mxu0 (!%p242_p9), %v340_v2  ;;  %1534 = vmatprep.subr.bf16.mxu1 (!%p242_p9), %v1704_v1  ;;  %v1708_v15 = vld [vmem:[%s2323_s3 + $0x20] sm:$0xff] (!%p242_p9)   ;;  %v1709_v20 = vld [vmem:[%s2323_s3 + $0x28] sm:$0xff] (!%p242_p9)   ;;  %v1710_v32 = vld [vmem:[%s2323_s3 + $0x30] sm:$0xff] (!%p242_p9)   ;;  %s1442_s13 = sshll.u32 (!%p242_p9), %s1864_s28, 11  ;;  %s1800_s19 = smov (!%p242_p9), [#allocation2]  }
  0x10   : > { %1535 = vmatpush3.bf16.msra.mxu1 (!%p242_p9), %v1704_v1  ;;  %v1711_v33 = vld [vmem:[%s2323_s3 + $0x38] sm:$0xff] (!%p242_p9)   ;;  %v1712_v34 = vld [vmem:[%s2325_s5] sm:$0xff] (!%p242_p9)   ;;  %v1713_v35 = vld [vmem:[%s2325_s5 + $0x8] sm:$0xff] (!%p242_p9)   ;;  %s2269_s17 = scalar_lea.hbm (!%p242_p9), %s2327_s7, %s1442_s13  ;;  %s1740_s20 = sshll.u32 (!%p242_p9), %s1800_s19, 4  ;;  %s1741_s20 = int_to_ptr.vmem [resolvable:$false] %s1740_s20 }
  0x11   : > { %1536 = vmatprep.subr.bf16.mxu1 (!%p242_p9), %v1705_v3  ;;  %1566 = vmatprep.subr.bf16.mxu0 (!%p242_p9), %v1712_v34  ;;  %v1714_v36 = vld [vmem:[%s2325_s5 + $0x10] sm:$0xff] (!%p242_p9)   ;;  %v1715_v37 = vld [vmem:[%s2325_s5 + $0x18] sm:$0xff] (!%p242_p9)   ;;  %v1716_v38 = vld [vmem:[%s2325_s5 + $0x20] sm:$0xff] (!%p242_p9)   ;;  %s1742_s21 = scalar_lea.vmem (!%p242_p9), %s1741_s20, 4096 }
  0x12   : > { %v1717_v39 = vld [vmem:[%s2325_s5 + $0x28] sm:$0xff] (!%p242_p9)   ;;  %v1358_v40 = vld [vmem:[%s2322_s2] ss:$0 sm:$0xff] (!%p242_p9) }
  0x14   : > { %1537 = vmatpush3.bf16.msra.mxu1 (!%p242_p9), %v1705_v3 }
  0x15   : > { %s2335_s15 = smov (!%p274_p10, %s1356_s15), 31  ;;  %1538 = vmatprep.subr.bf16.mxu1 %v1706_v4 }
  0x16   : > { %s1357_s22 = sshll.u32 %s2335_s15, 3 }
  0x17   : > { %s1907_s8 = scalar_lea.vmem %s2320_s0, %s1357_s22  ;;  %s270_s22 = sand.u32 1, %s1790_s25  }
  0x18   : > { %v281_v6 = vld [vmem:[%s1907_s8] sm:$0xff]  ;;  %v282_v7 = vld [vmem:[%s1907_s8 + $0x8] sm:$0xff]  ;;  %v283_v8 = vld [vmem:[%s1907_s8 + $0x10] sm:$0xff]  ;;  %1539 = vmatpush3.bf16.msra.mxu1 %v1706_v4  ;;  %s2279_s28 = scalar_lea.sflag [#allocation3], %s270_s22 }
  0x19   : > { %v297_v9 = vpack.c.bf16 %v282_v7, %v281_v6  ;;  %v284_v10 = vld [vmem:[%s1907_s8 + $0x18] sm:$0xff]  ;;  %v285_v11 = vld [vmem:[%s1907_s8 + $0x20] sm:$0xff]  ;;  %v286_v12 = vld [vmem:[%s1907_s8 + $0x28] sm:$0xff]  ;;  %1540 = vmatprep.subr.bf16.mxu1 %v1707_v5 }
  0x1a   : > { %v298_v13 = vpack.c.bf16 %v284_v10, %v283_v8  ;;  %v299_v14 = vpack.c.bf16 %v286_v12, %v285_v11  ;;  %v287_v16 = vld [vmem:[%s1907_s8 + $0x30] sm:$0xff]  ;;  %v288_v17 = vld [vmem:[%s1907_s8 + $0x38] sm:$0xff]  ;;  %v289_v18 = vld [vmem:[%s1907_s8 + $0x40] sm:$0xff] }
  0x1b   : > { %1518 = vmatprep.mubr.msk.bf16.mxu0 %vm313_vm1, %v297_v9  ;;  %v290_v19 = vld [vmem:[%s1907_s8 + $0x48] sm:$0xff]  ;;  %v300_v21 = vpack.c.bf16 %v288_v17, %v287_v16  ;;  %v291_v23 = vld [vmem:[%s1907_s8 + $0x50] sm:$0xff]  ;;  %v292_v24 = vld [vmem:[%s1907_s8 + $0x58] sm:$0xff] }
  0x1c   : > { %1519 = vmatmul.mubr.msk.bf16.vlgmr.msra.gmra.mrb[0].mxu0 %vm313_vm1, %v298_v13  ;;  %1541 = vmatpush3.bf16.msra.mxu1 %v1707_v5  ;;  %v301_v22 = vpack.c.bf16 %v290_v19, %v289_v18  ;;  %v293_v25 = vld [vmem:[%s1907_s8 + $0x60] sm:$0xff]  ;;  %v294_v26 = vld [vmem:[%s1907_s8 + $0x68] sm:$0xff]  ;;  %v302_v27 = vpack.c.bf16 %v292_v24, %v291_v23  ;;  %v295_v29 = vld [vmem:[%s1907_s8 + $0x70] sm:$0xff] }
  0x1d   : > { %1522 = vmatprep.mubr.msk.bf16.mxu0 %vm313_vm1, %v299_v14  ;;  %1542 = vmatprep.subr.bf16.mxu1 %v1708_v15  ;;  %v303_v28 = vpack.c.bf16 %v294_v26, %v293_v25  ;;  %v296_v30 = vld [vmem:[%s1907_s8 + $0x78] sm:$0xff]  ;;  %s1355_s8 = sshll.u32 %s270_s22, 7 }
  0x1e   : > { %v304_v31 = vpack.c.bf16 %v296_v30, %v295_v29  ;;  %1567 = vmatpush3.bf16.msra.mxu0 %v1712_v34  ;;  %v1719_v34 = vld [vmem:[%s2325_s5 + $0x38] sm:$0xff]   ;;  %s2224_s9 = scalar_lea.vmem [#allocation2], %s1355_s8 }
  0x1f   : > { %1568 = vmatprep.subr.bf16.mxu0 %v1713_v35  ;;  %s1289_s14 = sshll.u32 %s2224_s9, 4  ;;  %s2271_s14 = int_to_ptr.vmem [resolvable:$true] %s1289_s14 }
  0x20   : > { %1543 = vmatpush3.bf16.msra.mxu1 %v1708_v15  ;;  %s1736_s18 = scalar_lea.vmem %s2271_s14, 2048  ;;  %p1743_p0 = scmp.lt.s32.totalorder %s2271_s14, %s1741_s20 }
  0x21   : > { %1544 = vmatprep.subr.bf16.mxu1 %v1709_v20  ;;  %p1737_p11 = scmp.ne.s32.totalorder %s2271_s14, %s1736_s18  ;;  %p1744_p1 = scmp.lt.s32.totalorder %s1742_s21, %s1736_s18 }
  0x22   : > { %1569 = vmatpush3.bf16.msra.mxu0 %v1713_v35  ;;  %v1720_v35 = vld [vmem:[%s2323_s3 + $0x40] sm:$0xff]  }
  0x23   : > { %1570 = vmatprep.subr.bf16.mxu0 %v1714_v36  ;;  %p1738_p12 = pnand %p1737_p11, %p1881_p5  ;;  %p1745_p2 = por %p1744_p1, %p1743_p0 }
  0x24   : > { %1523 = vmatmul.mubr.msk.bf16.gmra.mrb[4].mxu0 %vm313_vm1, %v300_v21  ;;  %1545 = vmatpush3.bf16.msra.mxu1 %v1709_v20 }
  0x25   : > { %1526 = vmatprep.mubr.msk.bf16.mxu0 %vm313_vm1, %v301_v22  ;;  %1546 = vmatprep.subr.bf16.mxu1 %v1710_v32  ;;  %p1739_p13 = pneg %p1738_p12 }
  0x26   : > { %1571 = vmatpush3.bf16.msra.mxu0 %v1714_v36  ;;  %v1721_v36 = vld [vmem:[%s2323_s3 + $0x48] sm:$0xff]  }
  0x27   : > { %1572 = vmatprep.subr.bf16.mxu0 %v1715_v37  ;;  %p1746_p3 = pnand %p1745_p2, %p1739_p13 }
  0x28   : > { %1547 = vmatpush3.bf16.msra.mxu1 %v1710_v32 }
  0x29   : > { %1548 = vmatprep.subr.bf16.mxu1 %v1711_v33 }
  0x2a   : > { %1573 = vmatpush3.bf16.msra.mxu0 %v1715_v37  ;;  %v1722_v37 = vld [vmem:[%s2323_s3 + $0x50] sm:$0xff]  }
  0x2b   : > { %1574 = vmatprep.subr.bf16.mxu0 %v1716_v38 }
  0x2c   : > { %1527 = vmatmul.mubr.msk.bf16.gmra.mrb[8].mxu0 %vm313_vm1, %v302_v27  ;;  %1549 = vmatpush3.bf16.msra.mxu1 %v1711_v33  ;;  %v1718_v33 = vld [vmem:[%s2325_s5 + $0x30] sm:$0xff]  }
  0x2d   : > { %1530 = vmatprep.mubr.msk.bf16.mxu0 %vm313_vm1, %v303_v28  ;;  %1598 = vmatprep.subr.bf16.mxu1 %v1720_v35 }
  0x2e   : > { %1575 = vmatpush3.bf16.msra.mxu0 %v1716_v38  ;;  %v1723_v38 = vld [vmem:[%s2323_s3 + $0x58] sm:$0xff]  }
  0x2f   : > { %1576 = vmatprep.subr.bf16.mxu0 %v1717_v39 }
  0x32   : > { %1577 = vmatpush3.bf16.msra.mxu0 %v1717_v39  ;;  %v1724_v39 = vld [vmem:[%s2323_s3 + $0x60] sm:$0xff]  }
  0x33   : > { %1578 = vmatprep.subr.bf16.mxu0 %v1718_v33 }
  0x34   : > { %1531 = vmatmul.mubr.msk.bf16.gmra.mrb[12].mxu0 %vm313_vm1, %v304_v31 }
  0x36   : > { %1579 = vmatpush3.bf16.msra.mxu0 %v1718_v33 }
  0x37   : > { %1580 = vmatprep.subr.bf16.mxu0 %v1719_v34 }
  0x3a   : > { %1581 = vmatpush3.bf16.msra.mxu0 %v1719_v34 }
  0xef   : > { %v1520_v41 = vpop.f32.mrb[0].mxu0 }
  0xf0   : > { %v376_v42 = vpop.f32.mrb[1].mxu0  ;;  %v1971_v45 = vadd.f32 %v1520_v41, %v1358_v40 }
  0xf1   : > { %v1969_v43 = vadd.f32 %v1358_v40, %v376_v42  ;;  %v1521_v44 = vpop.f32.mrb[2].mxu0 }
  0xf2   : > { %v1973_v46 = vadd.f32 %v1521_v44, %v1358_v40  ;;  %v379_v47 = vpop.f32.mrb[3].mxu0  ;;  %v441_v52 = vmax.f32 %v1971_v45, 0.0 }
  0xf3   : > { %v1975_v48 = vadd.f32 %v1358_v40, %v379_v47  ;;  %v439_v50 = vmax.f32 %v1969_v43, 0.0 }
  0xf4   : > { %v442_v49 = vmax.f32 %v1973_v46, 0.0 }
  0xf5   : > { %v440_v51 = vmax.f32 %v1975_v48, 0.0 }
  0xf6   : > { %v456_v55 = vpack.c.bf16 %v442_v49, %v441_v52 }
  0xf7   : > { %v1524_v53 = vpop.f32.mrb[4].mxu0  ;;  %v455_v54 = vpack.c.bf16 %v440_v51, %v439_v50 }
  0xf8   : > { %v392_v56 = vpop.f32.mrb[5].mxu0  ;;  %v1991_v59 = vadd.f32 %v1524_v53, %v1358_v40 }
  0xf9   : > { %v1989_v57 = vadd.f32 %v1358_v40, %v392_v56  ;;  %v1525_v58 = vpop.f32.mrb[6].mxu0  ;;  %1550 = vmatprep.mubr.bf16.mxu1 %v455_v54 }
  0xfa   : > { %v1993_v60 = vadd.f32 %v1525_v58, %v1358_v40  ;;  %v395_v61 = vpop.f32.mrb[7].mxu0  ;;  %1551 = vmatmul.mubr.bf16.vlgmr.msra.gmra.mrb[0].mxu1 %v456_v55  ;;  %v445_v2 = vmax.f32 %v1991_v59, 0.0 }
  0xfb   : > { %v1995_v62 = vadd.f32 %v1358_v40, %v395_v61  ;;  %v443_v0 = vmax.f32 %v1989_v57, 0.0  ;;  %1599 = vmatpush3.bf16.msra.mxu1 %v1720_v35 }
  0xfc   : > { %v446_v63 = vmax.f32 %v1993_v60, 0.0  ;;  %1600 = vmatprep.subr.bf16.mxu1 %v1721_v36 }
  0xfd   : > { %v444_v1 = vmax.f32 %v1995_v62, 0.0 }
  0xfe   : > { %v458_v5 = vpack.c.bf16 %v446_v63, %v445_v2 }
  0xff   : > { %v457_v3 = vpack.c.bf16 %v444_v1, %v443_v0  ;;  %v1528_v4 = vpop.f32.mrb[8].mxu0  ;;  %1601 = vmatpush3.bf16.msra.mxu1 %v1721_v36 }
 0x100   : > { %v408_v6 = vpop.f32.mrb[9].mxu0  ;;  %v2011_v9 = vadd.f32 %v1528_v4, %v1358_v40  ;;  %1602 = vmatprep.subr.bf16.mxu1 %v1722_v37 }
 0x101   : > { %v2009_v7 = vadd.f32 %v1358_v40, %v408_v6  ;;  %v1529_v8 = vpop.f32.mrb[10].mxu0  ;;  %1554 = vmatprep.mubr.bf16.mxu1 %v457_v3 }
 0x102   : > { %v2013_v10 = vadd.f32 %v1529_v8, %v1358_v40  ;;  %v411_v11 = vpop.f32.mrb[11].mxu0  ;;  %1555 = vmatmul.mubr.bf16.gmra.mrb[4].mxu1 %v458_v5  ;;  %v449_v16 = vmax.f32 %v2011_v9, 0.0 }
 0x103   : > { %v2015_v12 = vadd.f32 %v1358_v40, %v411_v11  ;;  %v447_v14 = vmax.f32 %v2009_v7, 0.0  ;;  %1603 = vmatpush3.bf16.msra.mxu1 %v1722_v37 }
 0x104   : > { %v450_v13 = vmax.f32 %v2013_v10, 0.0  ;;  %1604 = vmatprep.subr.bf16.mxu1 %v1723_v38 }
 0x105   : > { %v448_v15 = vmax.f32 %v2015_v12, 0.0 }
 0x106   : > { %v460_v19 = vpack.c.bf16 %v450_v13, %v449_v16 }
 0x107   : > { %v459_v17 = vpack.c.bf16 %v448_v15, %v447_v14  ;;  %v1532_v18 = vpop.f32.mrb[12].mxu0  ;;  %1605 = vmatpush3.bf16.msra.mxu1 %v1723_v38 }
 0x108   : > { %v424_v20 = vpop.f32.mrb[13].mxu0  ;;  %v2031_v23 = vadd.f32 %v1532_v18, %v1358_v40  ;;  %1606 = vmatprep.subr.bf16.mxu1 %v1724_v39 }
 0x109   : > { %v2029_v21 = vadd.f32 %v1358_v40, %v424_v20  ;;  %v1533_v22 = vpop.f32.mrb[14].mxu0  ;;  %1558 = vmatprep.mubr.bf16.mxu1 %v459_v17 }
 0x10a   : > { %v2033_v24 = vadd.f32 %v1533_v22, %v1358_v40  ;;  %v427_v25 = vpop.f32.mrb[15].mxu0  ;;  %1559 = vmatmul.mubr.bf16.gmra.mrb[8].mxu1 %v460_v19  ;;  %v453_v30 = vmax.f32 %v2031_v23, 0.0  ;;  %v1735_v23 = vld [vmem:[%s2325_s5 + $0x78] sm:$0xff]  }
 0x10b   : > { %v2035_v26 = vadd.f32 %v1358_v40, %v427_v25  ;;  %v451_v28 = vmax.f32 %v2029_v21, 0.0  ;;  %1607 = vmatpush3.bf16.msra.mxu1 %v1724_v39  ;;  %v1367_v40 = vld [vmem:[%s2324_s4] ss:$0 sm:$0xff]  ;;  %v1734_v21 = vld [vmem:[%s2325_s5 + $0x70] sm:$0xff]  }
 0x10c   : > { %v454_v27 = vmax.f32 %v2033_v24, 0.0 }
 0x10d   : > { %v452_v29 = vmax.f32 %v2035_v26, 0.0  ;;  %v1402_v26 = vld [vmem:[%s2324_s4 + $0x1] ss:$0 sm:$0xff] }
 0x10e   : > { %v462_v32 = vpack.c.bf16 %v454_v27, %v453_v30 }
 0x10f   : > { %v461_v31 = vpack.c.bf16 %v452_v29, %v451_v28 }
 0x111   : > { %1562 = vmatprep.mubr.bf16.mxu1 %v461_v31 }
 0x112   : > { %1563 = vmatmul.mubr.bf16.gmra.mrb[12].mxu1 %v462_v32 }
 0x1cd   : > { %v1552_v41 = vpop.f32.mrb[0].mxu1 }
 0x1ce   : > { %v577_v42 = vadd.f32 %v1552_v41, %v1367_v40  ;;  %v568_v44 = vpop.f32.mrb[1].mxu1 }
 0x1cf   : > { %v569_v47 = vadd.f32 %v1367_v40, %v568_v44  ;;  %v1553_v53 = vpop.f32.mrb[2].mxu1 }
 0x1d0   : > { %v580_v54 = vadd.f32 %v1553_v53, %v1367_v40  ;;  %v571_v55 = vpop.f32.mrb[3].mxu1  ;;  %v633_v58 = vmax.f32 %v577_v42, 0.0 }
 0x1d1   : > { %v572_v56 = vadd.f32 %v1367_v40, %v571_v55  ;;  %v631_v3 = vmax.f32 %v569_v47, 0.0 }
 0x1d2   : > { %v634_v61 = vmax.f32 %v580_v54, 0.0 }
 0x1d3   : > { %v632_v4 = vmax.f32 %v572_v56, 0.0 }
 0x1d4   : > { %v648_v5 = vpack.c.bf16 %v634_v61, %v633_v58 }
 0x1d5   : > { %v647_v6 = vpack.c.bf16 %v632_v4, %v631_v3  ;;  %v1556_v8 = vpop.f32.mrb[4].mxu1 }
 0x1d6   : > { %v593_v11 = vadd.f32 %v1556_v8, %v1367_v40  ;;  %v584_v17 = vpop.f32.mrb[5].mxu1 }
 0x1d7   : > { %v585_v18 = vadd.f32 %v1367_v40, %v584_v17  ;;  %v1557_v19 = vpop.f32.mrb[6].mxu1  ;;  %1582 = vmatprep.mubr.bf16.mxu0 %v647_v6 }
 0x1d8   : > { %v596_v20 = vadd.f32 %v1557_v19, %v1367_v40  ;;  %v587_v22 = vpop.f32.mrb[7].mxu1  ;;  %1583 = vmatmul.mubr.bf16.vlgmr.msra.gmra.mrb[16].mxu0 %v648_v5  ;;  %v637_v31 = vmax.f32 %v593_v11, 0.0 }
 0x1d9   : > { %v588_v25 = vadd.f32 %v1367_v40, %v587_v22  ;;  %v635_v33 = vmax.f32 %v585_v18, 0.0 }
 0x1da   : > { %v638_v32 = vmax.f32 %v596_v20, 0.0 }
 0x1db   : > { %v636_v34 = vmax.f32 %v588_v25, 0.0 }
 0x1dc   : > { %v650_v35 = vpack.c.bf16 %v638_v32, %v637_v31 }
 0x1dd   : > { %v649_v36 = vpack.c.bf16 %v636_v34, %v635_v33  ;;  %v1560_v37 = vpop.f32.mrb[8].mxu1  ;;  %v1725_v34 = vld [vmem:[%s2323_s3 + $0x68] sm:$0xff]  }
 0x1de   : > { %v609_v38 = vadd.f32 %v1560_v37, %v1367_v40  ;;  %v600_v39 = vpop.f32.mrb[9].mxu1  ;;  %1608 = vmatprep.subr.bf16.mxu1 %v1725_v34  ;;  %v1729_v37 = vld [vmem:[%s2325_s5 + $0x48] sm:$0xff]  }
 0x1df   : > { %v601_v41 = vadd.f32 %v1367_v40, %v600_v39  ;;  %v1561_v42 = vpop.f32.mrb[10].mxu1  ;;  %1586 = vmatprep.mubr.bf16.mxu0 %v649_v36  ;;  %1609 = vmatpush3.bf16.msra.mxu1 %v1725_v34  ;;  %v1728_v36 = vld [vmem:[%s2325_s5 + $0x40] sm:$0xff]   ;;  %v1731_v39 = vld [vmem:[%s2325_s5 + $0x58] sm:$0xff]  }
 0x1e0   : > { %v612_v44 = vadd.f32 %v1561_v42, %v1367_v40  ;;  %v603_v47 = vpop.f32.mrb[11].mxu1  ;;  %1587 = vmatmul.mubr.bf16.gmra.mrb[20].mxu0 %v650_v35  ;;  %v641_v54 = vmax.f32 %v609_v38, 0.0  ;;  %v1726_v35 = vld [vmem:[%s2323_s3 + $0x70] sm:$0xff]   ;;  %1630 = vmatprep.subr.bf16.mxu0 %v1728_v36  ;;  %v1733_v42 = vld [vmem:[%s2325_s5 + $0x68] sm:$0xff]  }
 0x1e1   : > { %v604_v53 = vadd.f32 %v1367_v40, %v603_v47  ;;  %v639_v56 = vmax.f32 %v601_v41, 0.0  ;;  %1610 = vmatprep.subr.bf16.mxu1 %v1726_v35  ;;  %1631 = vmatpush3.bf16.msra.mxu0 %v1728_v36  ;;  %v1730_v38 = vld [vmem:[%s2325_s5 + $0x50] sm:$0xff]   ;;  %v1732_v41 = vld [vmem:[%s2325_s5 + $0x60] sm:$0xff]  }
 0x1e2   : > { %v642_v55 = vmax.f32 %v612_v44, 0.0  ;;  %1632 = vmatprep.subr.bf16.mxu0 %v1729_v37  ;;  %v2103_v44 = vld [vmem:[%s2326_s6] ss:$0 sm:$0xff] }
 0x1e3   : > { %v640_v58 = vmax.f32 %v604_v53, 0.0  ;;  %1611 = vmatpush3.bf16.msra.mxu1 %v1726_v35 }
 0x1e4   : > { %v652_v61 = vpack.c.bf16 %v642_v55, %v641_v54 }
 0x1e5   : > { %v651_v3 = vpack.c.bf16 %v640_v58, %v639_v56  ;;  %v1564_v4 = vpop.f32.mrb[12].mxu1  ;;  %1633 = vmatpush3.bf16.msra.mxu0 %v1729_v37 }
 0x1e6   : > { %v625_v5 = vadd.f32 %v1564_v4, %v1367_v40  ;;  %v616_v6 = vpop.f32.mrb[13].mxu1  ;;  %1634 = vmatprep.subr.bf16.mxu0 %v1730_v38 }
 0x1e7   : > { %v617_v8 = vadd.f32 %v1367_v40, %v616_v6  ;;  %v1565_v11 = vpop.f32.mrb[14].mxu1  ;;  %1590 = vmatprep.mubr.bf16.mxu0 %v651_v3 }
 0x1e8   : > { %v628_v17 = vadd.f32 %v1565_v11, %v1367_v40  ;;  %v619_v18 = vpop.f32.mrb[15].mxu1  ;;  %1591 = vmatmul.mubr.bf16.gmra.mrb[24].mxu0 %v652_v61  ;;  %v645_v20 = vmax.f32 %v625_v5, 0.0 }
 0x1e9   : > { %v620_v19 = vadd.f32 %v1367_v40, %v619_v18  ;;  %v643_v25 = vmax.f32 %v617_v8, 0.0  ;;  %v1727_v40 = vld [vmem:[%s2323_s3 + $0x78] sm:$0xff]   ;;  %1635 = vmatpush3.bf16.msra.mxu0 %v1730_v38 }
 0x1ea   : > { %v646_v22 = vmax.f32 %v628_v17, 0.0  ;;  %1612 = vmatprep.subr.bf16.mxu1 %v1727_v40  ;;  %1636 = vmatprep.subr.bf16.mxu0 %v1731_v39 }
 0x1eb   : > { %v644_v31 = vmax.f32 %v620_v19, 0.0  ;;  %1613 = vmatpush3.bf16.msra.mxu1 %v1727_v40 }
 0x1ec   : > { %v654_v32 = vpack.c.bf16 %v646_v22, %v645_v20 }
 0x1ed   : > { %v653_v33 = vpack.c.bf16 %v644_v31, %v643_v25  ;;  %1637 = vmatpush3.bf16.msra.mxu0 %v1731_v39 }
 0x1ee   : > { %1638 = vmatprep.subr.bf16.mxu0 %v1732_v41 }
 0x1ef   : > { %1594 = vmatprep.mubr.bf16.mxu0 %v653_v33 }
 0x1f0   : > { %1595 = vmatmul.mubr.bf16.gmra.mrb[28].mxu0 %v654_v32 }
 0x1f1   : > { %1639 = vmatpush3.bf16.msra.mxu0 %v1732_v41 }
 0x1f2   : > { %1640 = vmatprep.subr.bf16.mxu0 %v1733_v42 }
 0x1f5   : > { %1641 = vmatpush3.bf16.msra.mxu0 %v1733_v42 }
 0x1f6   : > { %1642 = vmatprep.subr.bf16.mxu0 %v1734_v21 }
 0x1f9   : > { %1643 = vmatpush3.bf16.msra.mxu0 %v1734_v21 }
 0x1fa   : > { %1644 = vmatprep.subr.bf16.mxu0 %v1735_v23 }
 0x1fd   : > { %1645 = vmatpush3.bf16.msra.mxu0 %v1735_v23 }
 0x2ab   : > { %v1584_v47 = vpop.f32.mrb[16].mxu0 }
 0x2ac   : > { %v769_v53 = vadd.f32 %v1584_v47, %v2103_v44  ;;  %v760_v54 = vpop.f32.mrb[17].mxu0 }
 0x2ad   : > { %v761_v55 = vadd.f32 %v2103_v44, %v760_v54  ;;  %v1585_v56 = vpop.f32.mrb[18].mxu0 }
 0x2ae   : > { %v772_v58 = vadd.f32 %v1585_v56, %v2103_v44  ;;  %v763_v61 = vpop.f32.mrb[19].mxu0  ;;  %v825_v5 = vmax.f32 %v769_v53, 0.0 }
 0x2af   : > { %v823_v3 = vmax.f32 %v761_v55, 0.0  ;;  %v764_v4 = vadd.f32 %v2103_v44, %v763_v61 }
 0x2b0   : > { %v826_v6 = vmax.f32 %v772_v58, 0.0  ;;  %v2123_v20 = vadd.f32 %v825_v5, %v441_v52 }
 0x2b1   : > { %v824_v8 = vmax.f32 %v764_v4, 0.0  ;;  %v2115_v17 = vadd.f32 %v823_v3, %v439_v50 }
 0x2b2   : > { %v2111_v11 = vadd.f32 %v826_v6, %v442_v49 }
 0x2b3   : > { %v2119_v18 = vadd.f32 %v824_v8, %v440_v51  ;;  %v1588_v19 = vpop.f32.mrb[20].mxu0 }
 0x2b4   : > { %v785_v22 = vadd.f32 %v1588_v19, %v2103_v44  ;;  %v776_v25 = vpop.f32.mrb[21].mxu0  ;;  %v856_v50 = vpack.c.bf16 %v2111_v11, %v2123_v20 }
 0x2b5   : > { %v777_v46 = vadd.f32 %v2103_v44, %v776_v25  ;;  %v1589_v49 = vpop.f32.mrb[22].mxu0  ;;  %v855_v43 = vpack.c.bf16 %v2119_v18, %v2115_v17 }
 0x2b6   : > { %v788_v48 = vadd.f32 %v1589_v49, %v2103_v44  ;;  %v779_v51 = vpop.f32.mrb[23].mxu0  ;;  %v829_v52 = vmax.f32 %v785_v22, 0.0 }
 0x2b7   : > { %v827_v31 = vmax.f32 %v777_v46, 0.0  ;;  %v780_v45 = vadd.f32 %v2103_v44, %v779_v51  ;;  %1614 = vmatprep.mubr.bf16.mxu1 %v855_v43 }
 0x2b8   : > { %v830_v32 = vmax.f32 %v788_v48, 0.0  ;;  %1615 = vmatmul.mubr.bf16.vlgmr.msra.gmra.mrb[16].mxu1 %v856_v50  ;;  %v2147_v37 = vadd.f32 %v829_v52, %v445_v2 }
 0x2b9   : > { %v828_v33 = vmax.f32 %v780_v45, 0.0  ;;  %v2139_v35 = vadd.f32 %v827_v31, %v443_v0 }
 0x2ba   : > { %v2135_v34 = vadd.f32 %v830_v32, %v446_v63 }
 0x2bb   : > { %v2143_v40 = vadd.f32 %v828_v33, %v444_v1  ;;  %v1592_v36 = vpop.f32.mrb[24].mxu0 }
 0x2bc   : > { %v801_v38 = vadd.f32 %v1592_v36, %v2103_v44  ;;  %v792_v39 = vpop.f32.mrb[25].mxu0  ;;  %v858_v62 = vpack.c.bf16 %v2135_v34, %v2147_v37 }
 0x2bd   : > { %v793_v60 = vadd.f32 %v2103_v44, %v792_v39  ;;  %v1593_v63 = vpop.f32.mrb[26].mxu0  ;;  %v857_v57 = vpack.c.bf16 %v2143_v40, %v2139_v35 }
 0x2be   : > { %v804_v0 = vadd.f32 %v1593_v63, %v2103_v44  ;;  %v795_v41 = vpop.f32.mrb[27].mxu0  ;;  %v833_v2 = vmax.f32 %v801_v38, 0.0 }
 0x2bf   : > { %v831_v1 = vmax.f32 %v793_v60, 0.0  ;;  %v796_v59 = vadd.f32 %v2103_v44, %v795_v41  ;;  %1618 = vmatprep.mubr.bf16.mxu1 %v857_v57 }
 0x2c0   : > { %v834_v42 = vmax.f32 %v804_v0, 0.0  ;;  %1619 = vmatmul.mubr.bf16.gmra.mrb[20].mxu1 %v858_v62  ;;  %v2171_v58 = vadd.f32 %v833_v2, %v449_v16 }
 0x2c1   : > { %v832_v47 = vmax.f32 %v796_v59, 0.0  ;;  %v2163_v54 = vadd.f32 %v831_v1, %v447_v14 }
 0x2c2   : > { %v2159_v53 = vadd.f32 %v834_v42, %v450_v13 }
 0x2c3   : > { %v2167_v55 = vadd.f32 %v832_v47, %v448_v15  ;;  %v1596_v56 = vpop.f32.mrb[28].mxu0 }
 0x2c4   : > { %v817_v61 = vadd.f32 %v1596_v56, %v2103_v44  ;;  %v808_v3 = vpop.f32.mrb[29].mxu0  ;;  %v860_v12 = vpack.c.bf16 %v2159_v53, %v2171_v58 }
 0x2c5   : > { %v809_v10 = vadd.f32 %v2103_v44, %v808_v3  ;;  %v1597_v13 = vpop.f32.mrb[30].mxu0  ;;  %v859_v7 = vpack.c.bf16 %v2167_v55, %v2163_v54 }
 0x2c6   : > { %v820_v14 = vadd.f32 %v1597_v13, %v2103_v44  ;;  %v811_v4 = vpop.f32.mrb[31].mxu0  ;;  %v837_v16 = vmax.f32 %v817_v61, 0.0 }
 0x2c7   : > { %v835_v15 = vmax.f32 %v809_v10, 0.0  ;;  %v812_v9 = vadd.f32 %v2103_v44, %v811_v4  ;;  %1622 = vmatprep.mubr.bf16.mxu1 %v859_v7 }
 0x2c8   : > { %v838_v5 = vmax.f32 %v820_v14, 0.0  ;;  %1623 = vmatmul.mubr.bf16.gmra.mrb[24].mxu1 %v860_v12  ;;  %v2195_v44 = vadd.f32 %v837_v16, %v453_v30 }
 0x2c9   : > { %v836_v6 = vmax.f32 %v812_v9, 0.0  ;;  %v2187_v19 = vadd.f32 %v835_v15, %v451_v28 }
 0x2ca   : > { %v2183_v8 = vadd.f32 %v838_v5, %v454_v27 }
 0x2cb   : > { %v2191_v22 = vadd.f32 %v836_v6, %v452_v29 }
 0x2cc   : > { %v862_v24 = vpack.c.bf16 %v2183_v8, %v2195_v44 }
 0x2cd   : > { %v861_v25 = vpack.c.bf16 %v2191_v22, %v2187_v19 }
 0x2cf   : > { %1626 = vmatprep.mubr.bf16.mxu1 %v861_v25 }
 0x2d0   : > { %1627 = vmatmul.mubr.bf16.gmra.mrb[28].mxu1 %v862_v24 }
 0x38b   : > { %v1616_v27 = vpop.f32.mrb[16].mxu1 }
 0x38c   : > { %v979_v28 = vadd.f32 %v1616_v27, %v1402_v26  ;;  %v970_v29 = vpop.f32.mrb[17].mxu1 }
 0x38d   : > { %v971_v30 = vadd.f32 %v1402_v26, %v970_v29  ;;  %v1617_v46 = vpop.f32.mrb[18].mxu1 }
 0x38e   : > { %v982_v49 = vadd.f32 %v1617_v46, %v1402_v26  ;;  %v973_v43 = vpop.f32.mrb[19].mxu1  ;;  %v1035_v48 = vmax.f32 %v979_v28, 0.0 }
 0x38f   : > { %v974_v50 = vadd.f32 %v1402_v26, %v973_v43  ;;  %v1033_v31 = vmax.f32 %v971_v30, 0.0 }
 0x390   : > { %v1036_v51 = vmax.f32 %v982_v49, 0.0 }
 0x391   : > { %v1034_v45 = vmax.f32 %v974_v50, 0.0 }
 0x392   : > { %v1050_v52 = vpack.c.bf16 %v1036_v51, %v1035_v48  ;;  %v2214_v51 = vld [vmem:[%s2326_s6 + $0x1] ss:$0 sm:$0xff] }
 0x393   : > { %v1049_v32 = vpack.c.bf16 %v1034_v45, %v1033_v31  ;;  %v1620_v33 = vpop.f32.mrb[20].mxu1 }
 0x394   : > { %v995_v36 = vadd.f32 %v1620_v33, %v1402_v26  ;;  %v986_v38 = vpop.f32.mrb[21].mxu1 }
 0x395   : > { %v987_v39 = vadd.f32 %v1402_v26, %v986_v38  ;;  %v1621_v60 = vpop.f32.mrb[22].mxu1  ;;  %1646 = vmatprep.mubr.bf16.mxu0 %v1049_v32 }
 0x396   : > { %v998_v63 = vadd.f32 %v1621_v60, %v1402_v26  ;;  %v989_v57 = vpop.f32.mrb[23].mxu1  ;;  %1647 = vmatmul.mubr.bf16.vlgmr.msra.gmra.mrb[32].mxu0 %v1050_v52  ;;  %v1039_v41 = vmax.f32 %v995_v36, 0.0 }
 0x397   : > { %v990_v0 = vadd.f32 %v1402_v26, %v989_v57  ;;  %v1037_v1 = vmax.f32 %v987_v39, 0.0 }
 0x398   : > { %v1040_v62 = vmax.f32 %v998_v63, 0.0 }
 0x399   : > { %v1038_v59 = vmax.f32 %v990_v0, 0.0 }
 0x39a   : > { %v1052_v2 = vpack.c.bf16 %v1040_v62, %v1039_v41 }
 0x39b   : > { %v1051_v42 = vpack.c.bf16 %v1038_v59, %v1037_v1  ;;  %v1624_v47 = vpop.f32.mrb[24].mxu1 }
 0x39c   : > { %v1011_v56 = vadd.f32 %v1624_v47, %v1402_v26  ;;  %v1002_v61 = vpop.f32.mrb[25].mxu1 }
 0x39d   : > { %v1003_v3 = vadd.f32 %v1402_v26, %v1002_v61  ;;  %v1625_v10 = vpop.f32.mrb[26].mxu1  ;;  %1650 = vmatprep.mubr.bf16.mxu0 %v1051_v42 }
 0x39e   : > { %v1014_v13 = vadd.f32 %v1625_v10, %v1402_v26  ;;  %v1005_v7 = vpop.f32.mrb[27].mxu1  ;;  %1651 = vmatmul.mubr.bf16.gmra.mrb[36].mxu0 %v1052_v2  ;;  %v1043_v4 = vmax.f32 %v1011_v56, 0.0 }
 0x39f   : > { %v1006_v14 = vadd.f32 %v1402_v26, %v1005_v7  ;;  %v1041_v15 = vmax.f32 %v1003_v3, 0.0 }
 0x3a0   : > { %v1044_v12 = vmax.f32 %v1014_v13, 0.0 }
 0x3a1   : > { %v1042_v9 = vmax.f32 %v1006_v14, 0.0 }
 0x3a2   : > { %v1054_v16 = vpack.c.bf16 %v1044_v12, %v1043_v4 }
 0x3a3   : > { %v1053_v5 = vpack.c.bf16 %v1042_v9, %v1041_v15  ;;  %v1628_v6 = vpop.f32.mrb[28].mxu1 }
 0x3a4   : > { %v1027_v25 = vadd.f32 %v1628_v6, %v1402_v26  ;;  %v1018_v24 = vpop.f32.mrb[29].mxu1 }
 0x3a5   : > { %v1019_v21 = vadd.f32 %v1402_v26, %v1018_v24  ;;  %v1629_v23 = vpop.f32.mrb[30].mxu1  ;;  %1654 = vmatprep.mubr.bf16.mxu0 %v1053_v5 }
 0x3a6   : > { %v1030_v27 = vadd.f32 %v1629_v23, %v1402_v26  ;;  %v1021_v28 = vpop.f32.mrb[31].mxu1  ;;  %1655 = vmatmul.mubr.bf16.gmra.mrb[40].mxu0 %v1054_v16  ;;  %v1047_v30 = vmax.f32 %v1027_v25, 0.0 }
 0x3a7   : > { %v1022_v29 = vadd.f32 %v1402_v26, %v1021_v28  ;;  %v1045_v49 = vmax.f32 %v1019_v21, 0.0 }
 0x3a8   : > { %v1048_v46 = vmax.f32 %v1030_v27, 0.0 }
 0x3a9   : > { %v1046_v43 = vmax.f32 %v1022_v29, 0.0 }
 0x3aa   : > { %v1056_v50 = vpack.c.bf16 %v1048_v46, %v1047_v30 }
 0x3ab   : > { %v1055_v48 = vpack.c.bf16 %v1046_v43, %v1045_v49 }
 0x3ad   : > { %1658 = vmatprep.mubr.bf16.mxu0 %v1055_v48 }
 0x3ae   : > { %1659 = vmatmul.mubr.bf16.gmra.mrb[44].mxu0 %v1056_v50 }
 0x469   : > { %v1648_v31 = vpop.f32.mrb[32].mxu0 }
 0x46a   : > { %v1173_v45 = vadd.f32 %v1648_v31, %v2214_v51  ;;  %v1164_v26 = vpop.f32.mrb[33].mxu0 }
 0x46b   : > { %v1165_v52 = vadd.f32 %v2214_v51, %v1164_v26  ;;  %v1649_v32 = vpop.f32.mrb[34].mxu0 }
 0x46c   : > { %v1229_v33 = vmax.f32 %v1173_v45, 0.0  ;;  %v1176_v36 = vadd.f32 %v1649_v32, %v2214_v51  ;;  %v1167_v38 = vpop.f32.mrb[35].mxu0 }
 0x46d   : > { %v1227_v39 = vmax.f32 %v1165_v52, 0.0  ;;  %v1168_v60 = vadd.f32 %v2214_v51, %v1167_v38 }
 0x46e   : > { %v1245_v63 = vadd.f32 %v1229_v33, %v2123_v20  ;;  %v1230_v57 = vmax.f32 %v1176_v36, 0.0 }
 0x46f   : > { %v1243_v0 = vadd.f32 %v1227_v39, %v2115_v17  ;;  %v1228_v41 = vmax.f32 %v1168_v60, 0.0 }
 0x470   : > { %1261 = vst [vmem:[%s2224_s9 + $0x10] sm:$0xff] %v1245_v63  ;;  %v1246_v62 = vadd.f32 %v1230_v57, %v2111_v11 }
 0x471   : > { %1259 = vst [vmem:[%s2224_s9] sm:$0xff] %v1243_v0  ;;  %v1244_v1 = vadd.f32 %v1228_v41, %v2119_v18  ;;  %v1652_v59 = vpop.f32.mrb[36].mxu0 }
 0x472   : > { %1262 = vst [vmem:[%s2224_s9 + $0x18] sm:$0xff] %v1246_v62  ;;  %v1189_v20 = vadd.f32 %v1652_v59, %v2214_v51  ;;  %v1180_v17 = vpop.f32.mrb[37].mxu0 }
 0x473   : > { %1260 = vst [vmem:[%s2224_s9 + $0x8] sm:$0xff] %v1244_v1  ;;  %v1181_v2 = vadd.f32 %v2214_v51, %v1180_v17  ;;  %v1653_v42 = vpop.f32.mrb[38].mxu0 }
 0x474   : > { %v1233_v47 = vmax.f32 %v1189_v20, 0.0  ;;  %v1192_v56 = vadd.f32 %v1653_v42, %v2214_v51  ;;  %v1183_v11 = vpop.f32.mrb[39].mxu0 }
 0x475   : > { %v1231_v61 = vmax.f32 %v1181_v2, 0.0  ;;  %v1184_v18 = vadd.f32 %v2214_v51, %v1183_v11 }
 0x476   : > { %v1249_v3 = vadd.f32 %v1233_v47, %v2147_v37  ;;  %v1234_v10 = vmax.f32 %v1192_v56, 0.0 }
 0x477   : > { %v1247_v13 = vadd.f32 %v1231_v61, %v2139_v35  ;;  %v1232_v7 = vmax.f32 %v1184_v18, 0.0 }
 0x478   : > { %1265 = vst [vmem:[%s2224_s9 + $0x30] sm:$0xff] %v1249_v3  ;;  %v1250_v14 = vadd.f32 %v1234_v10, %v2135_v34 }
 0x479   : > { %1263 = vst [vmem:[%s2224_s9 + $0x20] sm:$0xff] %v1247_v13  ;;  %v1248_v4 = vadd.f32 %v1232_v7, %v2143_v40  ;;  %v1656_v12 = vpop.f32.mrb[40].mxu0 }
 0x47a   : > { %1266 = vst [vmem:[%s2224_s9 + $0x38] sm:$0xff] %v1250_v14  ;;  %v1205_v15 = vadd.f32 %v1656_v12, %v2214_v51  ;;  %v1196_v9 = vpop.f32.mrb[41].mxu0 }
 0x47b   : > { %1264 = vst [vmem:[%s2224_s9 + $0x28] sm:$0xff] %v1248_v4  ;;  %v1197_v37 = vadd.f32 %v2214_v51, %v1196_v9  ;;  %v1657_v16 = vpop.f32.mrb[42].mxu0 }
 0x47c   : > { %v1237_v35 = vmax.f32 %v1205_v15, 0.0  ;;  %v1208_v5 = vadd.f32 %v1657_v16, %v2214_v51  ;;  %v1199_v34 = vpop.f32.mrb[43].mxu0 }
 0x47d   : > { %v1235_v6 = vmax.f32 %v1197_v37, 0.0  ;;  %v1200_v40 = vadd.f32 %v2214_v51, %v1199_v34 }
 0x47e   : > { %v1253_v25 = vadd.f32 %v1237_v35, %v2171_v58  ;;  %v1238_v24 = vmax.f32 %v1208_v5, 0.0 }
 0x47f   : > { %v1251_v21 = vadd.f32 %v1235_v6, %v2163_v54  ;;  %v1236_v23 = vmax.f32 %v1200_v40, 0.0 }
 0x480   : > { %1269 = vst [vmem:[%s2224_s9 + $0x50] sm:$0xff] %v1253_v25  ;;  %v1254_v27 = vadd.f32 %v1238_v24, %v2159_v53 }
 0x481   : > { %1267 = vst [vmem:[%s2224_s9 + $0x40] sm:$0xff] %v1251_v21  ;;  %v1252_v28 = vadd.f32 %v1236_v23, %v2167_v55  ;;  %v1660_v29 = vpop.f32.mrb[44].mxu0 }
 0x482   : > { %1270 = vst [vmem:[%s2224_s9 + $0x58] sm:$0xff] %v1254_v27  ;;  %v1221_v30 = vadd.f32 %v1660_v29, %v2214_v51  ;;  %v1212_v46 = vpop.f32.mrb[45].mxu0 }
 0x483   : > { %1268 = vst [vmem:[%s2224_s9 + $0x48] sm:$0xff] %v1252_v28  ;;  %v1213_v58 = vadd.f32 %v2214_v51, %v1212_v46  ;;  %v1661_v49 = vpop.f32.mrb[46].mxu0 }
 0x484   : > { %v1241_v54 = vmax.f32 %v1221_v30, 0.0  ;;  %v1224_v43 = vadd.f32 %v1661_v49, %v2214_v51  ;;  %v1215_v53 = vpop.f32.mrb[47].mxu0 }
 0x485   : > { %v1239_v50 = vmax.f32 %v1213_v58, 0.0  ;;  %v1216_v55 = vadd.f32 %v2214_v51, %v1215_v53 }
 0x486   : > { %v1257_v48 = vadd.f32 %v1241_v54, %v2195_v44  ;;  %v1242_v31 = vmax.f32 %v1224_v43, 0.0 }
 0x487   : > { %v1255_v45 = vadd.f32 %v1239_v50, %v2187_v19  ;;  %v1240_v26 = vmax.f32 %v1216_v55, 0.0 }
 0x488   : > { %1273 = vst [vmem:[%s2224_s9 + $0x70] sm:$0xff] %v1257_v48  ;;  %v1258_v52 = vadd.f32 %v1242_v31, %v2183_v8 }
 0x489   : > { %1271 = vst [vmem:[%s2224_s9 + $0x60] sm:$0xff] %v1255_v45  ;;  %v1256_v44 = vadd.f32 %v1240_v26, %v2191_v22 }
 0x48a   : > { %1274 = vst [vmem:[%s2224_s9 + $0x78] sm:$0xff] %v1258_v52 }
 0x48b   : > { %1272 = vst [vmem:[%s2224_s9 + $0x68] sm:$0xff] %v1256_v44 }
 0x48c   : > { %1749 = shalt.err (!%p1746_p3)
}
 0x48d   : > { %s1750_s22 = scalar_lea.hbm %s2269_s17, 2048  ;;  %s1754_s8 = scalar_lea.hbm %s2327_s7, 4096 }
 0x48e   : > { %p1751_p4 = scmp.ne.s32.totalorder %s2269_s17, %s1750_s22  ;;  %p1755_p9 = scmp.lt.u32.totalorder %s2269_s17, %s2327_s7 }
 0x48f   : > { %p1756_p10 = scmp.lt.u32.totalorder %s1754_s8, %s1750_s22  ;;  %p1758_p12 = scmp.lt.u32.totalorder %s1750_s22, %s2269_s17 }
 0x490   : > { %p1752_p7 = pnand %p1751_p4, %p1881_p5 }
 0x491   : > { %p1757_p11 = por %p1756_p10, %p1755_p9 }
 0x492   : > { %p1753_p8 = pneg %p1752_p7 }
 0x493   : > { %p1759_p13 = por %p1758_p12, %p1757_p11 }
 0x495   : > { %p1760_p0 = pnand %p1759_p13, %p1753_p8 }
 0x497   : > { %1763 = shalt.err (!%p1760_p0)
}
 0x498   : > { %s1801_s15 = smov 128   ;;  %s1802_s16 = smov 8  }
 0x499   : > { %1663 = dma.vmem_to_hbm [thread:$0]  (%p1881_p5), %s2271_s14, 2048, %s2269_s17, %s2279_s28, %s1801_s15, %s1801_s15, %s1802_s16  }
 0x49a PF: > { %p1669_p1 = scmp.ge.s32.totalorder %s1798_s27, 2  ;;  %s1304_s18 = sand.u32 1, %s1786_s24  }
 0x49b   : > { %s1305_s19 = scalar_lea.sflag [#allocation3], %s1304_s18 }
 0x49c   : > { %p1666_p2 = pnand %p1669_p1, %p1885_p6 }
 0x49e   : > { %1781 = dma.done.wait (!%p1666_p2), %s1305_s19, 2048  }
 0x49f   : > { %1783 = vsyncadd (!%p1666_p2), %s1305_s19, 4294965248  ;;  %p17_p3 = scmp.ge.s32.totalorder %s1868_s30, 4   ;;  %s2330_s24 = smov %s1790_s25 }
 0x4a0   : > { %s2331_s25 = smov %s1794_s26  ;;  %s2332_s26 = smov %s1879_s10 }
 0x4a1   : > { %s2333_s27 = smov %s1868_s30  ;;  %19 = sbr.rel (!%p17_p3) target bundleno = 3 (0x3), region = 87 }
 0x4a8   :  { %1310 = vsyncpa [#allocation3], 1 }
 0x4a9   :  { %1312 = vsyncpa [#allocation3 + $0x1], 1 }

</bundles_post_ra>
